<compile_context>
chip_gen: v5e
topology: v5e:2x2
jax: 0.10.0
libtpu: 0.0.40
codegen_flags: <defaults>
</compile_context>

<pallas_src>
import functools

import jax
import jax.numpy as jnp
from jax.experimental import pallas as pl
from jax.experimental.pallas import tpu as pltpu

NUM_REPEATS = 2 + 5 * 3 + 3 * 3 * 3   # == 44 identical mm results concatenated
_GROUP_CHOICES = (1, 2, 4, 11, 22, 44)  # divisors of 44, fewest grid steps first


def _make_kernel(repeats_per_group: int, lane_aligned: bool):
    def kernel(x1_ref, x2_ref, o_ref, acc_ref):
        # Compute the (M, N) product exactly once (dedupe across grid steps).
        @pl.when(pl.program_id(0) == 0)
        def _():
            acc_ref[...] = jnp.dot(
                x1_ref[...], x2_ref[...], preferred_element_type=jnp.float32
            ).astype(acc_ref.dtype)

        acc = acc_ref[...]
        n = acc.shape[-1]
        if lane_aligned:
            # Every column chunk starts on a 128-lane boundary: unrolled,
            # unmasked lane-dense stores.
            for r in range(repeats_per_group):
                o_ref[:, r * n:(r + 1) * n] = acc
        else:
            # N not lane aligned: build the wide slab once and issue a single
            # full-block store (keeps stores lane-dense instead of 44 masked
            # partial stores).
            o_ref[...] = jnp.tile(acc, (1, repeats_per_group))

    return kernel


def _vmem_budget_bytes() -> int:
    """70% of physical VMEM (headroom for compiler scratch / double buffers)."""
    try:
        cap = int(pltpu.get_tpu_info().vmem_capacity_bytes)
    except Exception:
        cap = 64 << 20  # conservative: v7x per-TC VMEM
    return int(cap * 0.7), cap


def cat_mm(x1, x2):
    """Equivalent of Model.forward: concat of 44 identical mm(x1, x2) along dim 1."""
    M, K = x1.shape
    K2, N = x2.shape
    assert K == K2, "inner dimensions must match"

    dtype = x1.dtype
    itemsize = jnp.dtype(dtype).itemsize
    out_shape = jax.ShapeDtypeStruct((M, NUM_REPEATS * N), dtype)

    # ---- derive grid split from VMEM capacity (default: 1 grid step) -------
    budget, vmem_cap = _vmem_budget_bytes()
    in_bytes = (M * K + K * N) * itemsize          # whole-array resident inputs
    scratch_bytes = M * N * itemsize               # deduped matmul result
    groups = _GROUP_CHOICES[-1]
    need = None
    for g in _GROUP_CHOICES:
        per_group = NUM_REPEATS // g
        out_block_bytes = M * per_group * N * itemsize
        candidate_need = 2 * out_block_bytes + in_bytes + scratch_bytes
        if candidate_need <= budget:
            groups, need = g, candidate_need
            break
    if need is None:  # even per-repeat (M, N) blocks are too big -> best effort
        # TODO(synk): tile M/N as well for extremely large single-repeat blocks.
        per_group = NUM_REPEATS // groups
        need = 2 * (M * per_group * N * itemsize) + in_bytes + scratch_bytes
    repeats_per_group = NUM_REPEATS // groups

    lane_aligned = (N % 128 == 0)
    kernel = _make_kernel(repeats_per_group, lane_aligned)

    grid_spec = pltpu.PrefetchScalarGridSpec(
        num_scalar_prefetch=0,
        grid=(groups,),
        in_specs=[
            # Inputs are identical for every grid step: keep them resident in
            # VMEM as whole arrays, bypassing the pipelining machinery.
            pl.BlockSpec(memory_space=pltpu.MemorySpace.VMEM),
            pl.BlockSpec(memory_space=pltpu.MemorySpace.VMEM),
        ],
        # Each grid step writes one wide, lane-dense column slab.
        out_specs=pl.BlockSpec((M, repeats_per_group * N), lambda g: (0, g)),
        scratch_shapes=[pltpu.VMEM((M, N), dtype)],
    )

    cost = pl.CostEstimate(
        flops=2 * M * K * N,                       # matmul is computed once
        transcendentals=0,
        bytes_accessed=(M * K + K * N + M * NUM_REPEATS * N) * itemsize,
    )

    vmem_limit = int(min(vmem_cap, max(need + (8 << 20), 16 << 20)))

    return pl.pallas_call(
        kernel,
        out_shape=out_shape,
        grid_spec=grid_spec,
        compiler_params=pltpu.CompilerParams(
            # The cached-matmul scratch carries a dependency across the grid
            # axis, so it is sequential.
            dimension_semantics=("arbitrary",),
            vmem_limit_bytes=vmem_limit,
        ),
        cost_estimate=cost,
    )(x1, x2)


if __name__ == "__main__":
    # Small shapes consistent with torch.mm semantics. N = 128 keeps every
    # per-repeat column chunk lane-aligned; output last dim = 44*128 = 5632.
    M, K, N = 8, 32, 128

    key = jax.random.PRNGKey(0)
    k1, k2 = jax.random.split(key)
    x1 = jax.random.normal(k1, (M, K), dtype=jnp.float32)
    x2 = jax.random.normal(k2, (K, N), dtype=jnp.float32)

    out = cat_mm(x1, x2)
    out = jax.block_until_ready(out)

    # Reference check: 44 copies of x1 @ x2 concatenated along axis 1.
    ref = jnp.concatenate([x1 @ x2] * NUM_REPEATS, axis=1)
    assert out.shape == (M, NUM_REPEATS * N), out.shape
    assert jnp.allclose(out, ref, atol=1e-4, rtol=1e-4)

    print("KERNEL_OK")
</pallas_src>

<mosaic_0001>
module attributes {stable_mosaic.version = 11 : i64} {
  func.func @kernel(%arg0: i32, %arg1: memref<8x32xf32, #tpu.memory_space<vmem>>, %arg2: memref<32x128xf32, #tpu.memory_space<vmem>>, %arg3: memref<8x5632xf32, #tpu.memory_space<vmem>>, %arg4: memref<8x128xf32, #tpu.memory_space<vmem>>) attributes {dimension_semantics = [#tpu.dimension_semantics<arbitrary>], iteration_bounds = array<i64: 1>, scalar_prefetch = 0 : i64, scratch_operands = 1 : i64, tpu.core_type = #tpu.core_type<tc>, window_params = [{pipeline_mode = #tpu.pipeline_mode<synchronous>, transform_indices = @transform_0, window_bounds = array<i64: 8, 32>}, {pipeline_mode = #tpu.pipeline_mode<synchronous>, transform_indices = @transform_1, window_bounds = array<i64: 32, 128>}, {transform_indices = @transform_2, window_bounds = array<i64: 8, 5632>}]} {
    %c0_i32 = arith.constant 0 : i32
    %0 = arith.cmpi eq, %arg0, %c0_i32 : i32
    %1 = arith.extui %0 : i1 to i32
    %c0_i32_0 = arith.constant 0 : i32
    %2 = arith.cmpi ne, %1, %c0_i32_0 : i32
    scf.if %2 {
      %c0_47 = arith.constant 0 : index
      %c0_48 = arith.constant 0 : index
      %48 = vector.load %arg1[%c0_47, %c0_48] : memref<8x32xf32, #tpu.memory_space<vmem>>, vector<8x32xf32>
      %c0_49 = arith.constant 0 : index
      %c0_50 = arith.constant 0 : index
      %49 = vector.load %arg2[%c0_49, %c0_50] : memref<32x128xf32, #tpu.memory_space<vmem>>, vector<32x128xf32>
      %cst = arith.constant dense<0.000000e+00> : vector<8x128xf32>
      %50 = tpu.matmul %48, %49, %cst {dimension_numbers = #tpu.dot_dimension_numbers<[1], [0], [0], [1], [0, 0, 1, 1], [], []>} : vector<8x32xf32>, vector<32x128xf32>, vector<8x128xf32> -> vector<8x128xf32>
      %c0_51 = arith.constant 0 : index
      %c0_52 = arith.constant 0 : index
      %51 = vector.load %arg4[%c0_51, %c0_52] : memref<8x128xf32, #tpu.memory_space<vmem>>, vector<8x128xf32>
      tpu.vector_store %arg4[%c0_51, %c0_52], %50 {strides = array<i32>} : memref<8x128xf32, #tpu.memory_space<vmem>>, vector<8x128xf32>,
    } else {
    }
    %c0 = arith.constant 0 : index
    %c0_1 = arith.constant 0 : index
    %3 = vector.load %arg4[%c0, %c0_1] : memref<8x128xf32, #tpu.memory_space<vmem>>, vector<8x128xf32>
    %c0_2 = arith.constant 0 : index
    %c0_3 = arith.constant 0 : index
    %4 = vector.load %arg3[%c0_2, %c0_3] : memref<8x5632xf32, #tpu.memory_space<vmem>>, vector<8x128xf32>
    tpu.vector_store %arg3[%c0_2, %c0_3], %3 {strides = array<i32>} : memref<8x5632xf32, #tpu.memory_space<vmem>>, vector<8x128xf32>,
    %c0_4 = arith.constant 0 : index
    %c128 = arith.constant 128 : index
    %5 = vector.load %arg3[%c0_4, %c128] : memref<8x5632xf32, #tpu.memory_space<vmem>>, vector<8x128xf32>
    tpu.vector_store %arg3[%c0_4, %c128], %3 {strides = array<i32>} : memref<8x5632xf32, #tpu.memory_space<vmem>>, vector<8x128xf32>,
    %c0_5 = arith.constant 0 : index
    %c256 = arith.constant 256 : index
    %6 = vector.load %arg3[%c0_5, %c256] : memref<8x5632xf32, #tpu.memory_space<vmem>>, vector<8x128xf32>
    tpu.vector_store %arg3[%c0_5, %c256], %3 {strides = array<i32>} : memref<8x5632xf32, #tpu.memory_space<vmem>>, vector<8x128xf32>,
    %c0_6 = arith.constant 0 : index
    %c384 = arith.constant 384 : index
    %7 = vector.load %arg3[%c0_6, %c384] : memref<8x5632xf32, #tpu.memory_space<vmem>>, vector<8x128xf32>
    tpu.vector_store %arg3[%c0_6, %c384], %3 {strides = array<i32>} : memref<8x5632xf32, #tpu.memory_space<vmem>>, vector<8x128xf32>,
    %c0_7 = arith.constant 0 : index
    %c512 = arith.constant 512 : index
    %8 = vector.load %arg3[%c0_7, %c512] : memref<8x5632xf32, #tpu.memory_space<vmem>>, vector<8x128xf32>
    tpu.vector_store %arg3[%c0_7, %c512], %3 {strides = array<i32>} : memref<8x5632xf32, #tpu.memory_space<vmem>>, vector<8x128xf32>,
    %c0_8 = arith.constant 0 : index
    %c640 = arith.constant 640 : index
    %9 = vector.load %arg3[%c0_8, %c640] : memref<8x5632xf32, #tpu.memory_space<vmem>>, vector<8x128xf32>
    tpu.vector_store %arg3[%c0_8, %c640], %3 {strides = array<i32>} : memref<8x5632xf32, #tpu.memory_space<vmem>>, vector<8x128xf32>,
    %c0_9 = arith.constant 0 : index
    %c768 = arith.constant 768 : index
    %10 = vector.load %arg3[%c0_9, %c768] : memref<8x5632xf32, #tpu.memory_space<vmem>>, vector<8x128xf32>
    tpu.vector_store %arg3[%c0_9, %c768], %3 {strides = array<i32>} : memref<8x5632xf32, #tpu.memory_space<vmem>>, vector<8x128xf32>,
    %c0_10 = arith.constant 0 : index
    %c896 = arith.constant 896 : index
    %11 = vector.load %arg3[%c0_10, %c896] : memref<8x5632xf32, #tpu.memory_space<vmem>>, vector<8x128xf32>
    tpu.vector_store %arg3[%c0_10, %c896], %3 {strides = array<i32>} : memref<8x5632xf32, #tpu.memory_space<vmem>>, vector<8x128xf32>,
    %c0_11 = arith.constant 0 : index
    %c1024 = arith.constant 1024 : index
    %12 = vector.load %arg3[%c0_11, %c1024] : memref<8x5632xf32, #tpu.memory_space<vmem>>, vector<8x128xf32>
    tpu.vector_store %arg3[%c0_11, %c1024], %3 {strides = array<i32>} : memref<8x5632xf32, #tpu.memory_space<vmem>>, vector<8x128xf32>,
    %c0_12 = arith.constant 0 : index
    %c1152 = arith.constant 1152 : index
    %13 = vector.load %arg3[%c0_12, %c1152] : memref<8x5632xf32, #tpu.memory_space<vmem>>, vector<8x128xf32>
    tpu.vector_store %arg3[%c0_12, %c1152], %3 {strides = array<i32>} : memref<8x5632xf32, #tpu.memory_space<vmem>>, vector<8x128xf32>,
    %c0_13 = arith.constant 0 : index
    %c1280 = arith.constant 1280 : index
    %14 = vector.load %arg3[%c0_13, %c1280] : memref<8x5632xf32, #tpu.memory_space<vmem>>, vector<8x128xf32>
    tpu.vector_store %arg3[%c0_13, %c1280], %3 {strides = array<i32>} : memref<8x5632xf32, #tpu.memory_space<vmem>>, vector<8x128xf32>,
    %c0_14 = arith.constant 0 : index
    %c1408 = arith.constant 1408 : index
    %15 = vector.load %arg3[%c0_14, %c1408] : memref<8x5632xf32, #tpu.memory_space<vmem>>, vector<8x128xf32>
    tpu.vector_store %arg3[%c0_14, %c1408], %3 {strides = array<i32>} : memref<8x5632xf32, #tpu.memory_space<vmem>>, vector<8x128xf32>,
    %c0_15 = arith.constant 0 : index
    %c1536 = arith.constant 1536 : index
    %16 = vector.load %arg3[%c0_15, %c1536] : memref<8x5632xf32, #tpu.memory_space<vmem>>, vector<8x128xf32>
    tpu.vector_store %arg3[%c0_15, %c1536], %3 {strides = array<i32>} : memref<8x5632xf32, #tpu.memory_space<vmem>>, vector<8x128xf32>,
    %c0_16 = arith.constant 0 : index
    %c1664 = arith.constant 1664 : index
    %17 = vector.load %arg3[%c0_16, %c1664] : memref<8x5632xf32, #tpu.memory_space<vmem>>, vector<8x128xf32>
    tpu.vector_store %arg3[%c0_16, %c1664], %3 {strides = array<i32>} : memref<8x5632xf32, #tpu.memory_space<vmem>>, vector<8x128xf32>,
    %c0_17 = arith.constant 0 : index
    %c1792 = arith.constant 1792 : index
    %18 = vector.load %arg3[%c0_17, %c1792] : memref<8x5632xf32, #tpu.memory_space<vmem>>, vector<8x128xf32>
    tpu.vector_store %arg3[%c0_17, %c1792], %3 {strides = array<i32>} : memref<8x5632xf32, #tpu.memory_space<vmem>>, vector<8x128xf32>,
    %c0_18 = arith.constant 0 : index
    %c1920 = arith.constant 1920 : index
    %19 = vector.load %arg3[%c0_18, %c1920] : memref<8x5632xf32, #tpu.memory_space<vmem>>, vector<8x128xf32>
    tpu.vector_store %arg3[%c0_18, %c1920], %3 {strides = array<i32>} : memref<8x5632xf32, #tpu.memory_space<vmem>>, vector<8x128xf32>,
    %c0_19 = arith.constant 0 : index
    %c2048 = arith.constant 2048 : index
    %20 = vector.load %arg3[%c0_19, %c2048] : memref<8x5632xf32, #tpu.memory_space<vmem>>, vector<8x128xf32>
    tpu.vector_store %arg3[%c0_19, %c2048], %3 {strides = array<i32>} : memref<8x5632xf32, #tpu.memory_space<vmem>>, vector<8x128xf32>,
    %c0_20 = arith.constant 0 : index
    %c2176 = arith.constant 2176 : index
    %21 = vector.load %arg3[%c0_20, %c2176] : memref<8x5632xf32, #tpu.memory_space<vmem>>, vector<8x128xf32>
    tpu.vector_store %arg3[%c0_20, %c2176], %3 {strides = array<i32>} : memref<8x5632xf32, #tpu.memory_space<vmem>>, vector<8x128xf32>,
    %c0_21 = arith.constant 0 : index
    %c2304 = arith.constant 2304 : index
    %22 = vector.load %arg3[%c0_21, %c2304] : memref<8x5632xf32, #tpu.memory_space<vmem>>, vector<8x128xf32>
    tpu.vector_store %arg3[%c0_21, %c2304], %3 {strides = array<i32>} : memref<8x5632xf32, #tpu.memory_space<vmem>>, vector<8x128xf32>,
    %c0_22 = arith.constant 0 : index
    %c2432 = arith.constant 2432 : index
    %23 = vector.load %arg3[%c0_22, %c2432] : memref<8x5632xf32, #tpu.memory_space<vmem>>, vector<8x128xf32>
    tpu.vector_store %arg3[%c0_22, %c2432], %3 {strides = array<i32>} : memref<8x5632xf32, #tpu.memory_space<vmem>>, vector<8x128xf32>,
    %c0_23 = arith.constant 0 : index
    %c2560 = arith.constant 2560 : index
    %24 = vector.load %arg3[%c0_23, %c2560] : memref<8x5632xf32, #tpu.memory_space<vmem>>, vector<8x128xf32>
    tpu.vector_store %arg3[%c0_23, %c2560], %3 {strides = array<i32>} : memref<8x5632xf32, #tpu.memory_space<vmem>>, vector<8x128xf32>,
    %c0_24 = arith.constant 0 : index
    %c2688 = arith.constant 2688 : index
    %25 = vector.load %arg3[%c0_24, %c2688] : memref<8x5632xf32, #tpu.memory_space<vmem>>, vector<8x128xf32>
    tpu.vector_store %arg3[%c0_24, %c2688], %3 {strides = array<i32>} : memref<8x5632xf32, #tpu.memory_space<vmem>>, vector<8x128xf32>,
    %c0_25 = arith.constant 0 : index
    %c2816 = arith.constant 2816 : index
    %26 = vector.load %arg3[%c0_25, %c2816] : memref<8x5632xf32, #tpu.memory_space<vmem>>, vector<8x128xf32>
    tpu.vector_store %arg3[%c0_25, %c2816], %3 {strides = array<i32>} : memref<8x5632xf32, #tpu.memory_space<vmem>>, vector<8x128xf32>,
    %c0_26 = arith.constant 0 : index
    %c2944 = arith.constant 2944 : index
    %27 = vector.load %arg3[%c0_26, %c2944] : memref<8x5632xf32, #tpu.memory_space<vmem>>, vector<8x128xf32>
    tpu.vector_store %arg3[%c0_26, %c2944], %3 {strides = array<i32>} : memref<8x5632xf32, #tpu.memory_space<vmem>>, vector<8x128xf32>,
    %c0_27 = arith.constant 0 : index
    %c3072 = arith.constant 3072 : index
    %28 = vector.load %arg3[%c0_27, %c3072] : memref<8x5632xf32, #tpu.memory_space<vmem>>, vector<8x128xf32>
    tpu.vector_store %arg3[%c0_27, %c3072], %3 {strides = array<i32>} : memref<8x5632xf32, #tpu.memory_space<vmem>>, vector<8x128xf32>,
    %c0_28 = arith.constant 0 : index
    %c3200 = arith.constant 3200 : index
    %29 = vector.load %arg3[%c0_28, %c3200] : memref<8x5632xf32, #tpu.memory_space<vmem>>, vector<8x128xf32>
    tpu.vector_store %arg3[%c0_28, %c3200], %3 {strides = array<i32>} : memref<8x5632xf32, #tpu.memory_space<vmem>>, vector<8x128xf32>,
    %c0_29 = arith.constant 0 : index
    %c3328 = arith.constant 3328 : index
    %30 = vector.load %arg3[%c0_29, %c3328] : memref<8x5632xf32, #tpu.memory_space<vmem>>, vector<8x128xf32>
    tpu.vector_store %arg3[%c0_29, %c3328], %3 {strides = array<i32>} : memref<8x5632xf32, #tpu.memory_space<vmem>>, vector<8x128xf32>,
    %c0_30 = arith.constant 0 : index
    %c3456 = arith.constant 3456 : index
    %31 = vector.load %arg3[%c0_30, %c3456] : memref<8x5632xf32, #tpu.memory_space<vmem>>, vector<8x128xf32>
    tpu.vector_store %arg3[%c0_30, %c3456], %3 {strides = array<i32>} : memref<8x5632xf32, #tpu.memory_space<vmem>>, vector<8x128xf32>,
    %c0_31 = arith.constant 0 : index
    %c3584 = arith.constant 3584 : index
    %32 = vector.load %arg3[%c0_31, %c3584] : memref<8x5632xf32, #tpu.memory_space<vmem>>, vector<8x128xf32>
    tpu.vector_store %arg3[%c0_31, %c3584], %3 {strides = array<i32>} : memref<8x5632xf32, #tpu.memory_space<vmem>>, vector<8x128xf32>,
    %c0_32 = arith.constant 0 : index
    %c3712 = arith.constant 3712 : index
    %33 = vector.load %arg3[%c0_32, %c3712] : memref<8x5632xf32, #tpu.memory_space<vmem>>, vector<8x128xf32>
    tpu.vector_store %arg3[%c0_32, %c3712], %3 {strides = array<i32>} : memref<8x5632xf32, #tpu.memory_space<vmem>>, vector<8x128xf32>,
    %c0_33 = arith.constant 0 : index
    %c3840 = arith.constant 3840 : index
    %34 = vector.load %arg3[%c0_33, %c3840] : memref<8x5632xf32, #tpu.memory_space<vmem>>, vector<8x128xf32>
    tpu.vector_store %arg3[%c0_33, %c3840], %3 {strides = array<i32>} : memref<8x5632xf32, #tpu.memory_space<vmem>>, vector<8x128xf32>,
    %c0_34 = arith.constant 0 : index
    %c3968 = arith.constant 3968 : index
    %35 = vector.load %arg3[%c0_34, %c3968] : memref<8x5632xf32, #tpu.memory_space<vmem>>, vector<8x128xf32>
    tpu.vector_store %arg3[%c0_34, %c3968], %3 {strides = array<i32>} : memref<8x5632xf32, #tpu.memory_space<vmem>>, vector<8x128xf32>,
    %c0_35 = arith.constant 0 : index
    %c4096 = arith.constant 4096 : index
    %36 = vector.load %arg3[%c0_35, %c4096] : memref<8x5632xf32, #tpu.memory_space<vmem>>, vector<8x128xf32>
    tpu.vector_store %arg3[%c0_35, %c4096], %3 {strides = array<i32>} : memref<8x5632xf32, #tpu.memory_space<vmem>>, vector<8x128xf32>,
    %c0_36 = arith.constant 0 : index
    %c4224 = arith.constant 4224 : index
    %37 = vector.load %arg3[%c0_36, %c4224] : memref<8x5632xf32, #tpu.memory_space<vmem>>, vector<8x128xf32>
    tpu.vector_store %arg3[%c0_36, %c4224], %3 {strides = array<i32>} : memref<8x5632xf32, #tpu.memory_space<vmem>>, vector<8x128xf32>,
    %c0_37 = arith.constant 0 : index
    %c4352 = arith.constant 4352 : index
    %38 = vector.load %arg3[%c0_37, %c4352] : memref<8x5632xf32, #tpu.memory_space<vmem>>, vector<8x128xf32>
    tpu.vector_store %arg3[%c0_37, %c4352], %3 {strides = array<i32>} : memref<8x5632xf32, #tpu.memory_space<vmem>>, vector<8x128xf32>,
    %c0_38 = arith.constant 0 : index
    %c4480 = arith.constant 4480 : index
    %39 = vector.load %arg3[%c0_38, %c4480] : memref<8x5632xf32, #tpu.memory_space<vmem>>, vector<8x128xf32>
    tpu.vector_store %arg3[%c0_38, %c4480], %3 {strides = array<i32>} : memref<8x5632xf32, #tpu.memory_space<vmem>>, vector<8x128xf32>,
    %c0_39 = arith.constant 0 : index
    %c4608 = arith.constant 4608 : index
    %40 = vector.load %arg3[%c0_39, %c4608] : memref<8x5632xf32, #tpu.memory_space<vmem>>, vector<8x128xf32>
    tpu.vector_store %arg3[%c0_39, %c4608], %3 {strides = array<i32>} : memref<8x5632xf32, #tpu.memory_space<vmem>>, vector<8x128xf32>,
    %c0_40 = arith.constant 0 : index
    %c4736 = arith.constant 4736 : index
    %41 = vector.load %arg3[%c0_40, %c4736] : memref<8x5632xf32, #tpu.memory_space<vmem>>, vector<8x128xf32>
    tpu.vector_store %arg3[%c0_40, %c4736], %3 {strides = array<i32>} : memref<8x5632xf32, #tpu.memory_space<vmem>>, vector<8x128xf32>,
    %c0_41 = arith.constant 0 : index
    %c4864 = arith.constant 4864 : index
    %42 = vector.load %arg3[%c0_41, %c4864] : memref<8x5632xf32, #tpu.memory_space<vmem>>, vector<8x128xf32>
    tpu.vector_store %arg3[%c0_41, %c4864], %3 {strides = array<i32>} : memref<8x5632xf32, #tpu.memory_space<vmem>>, vector<8x128xf32>,
    %c0_42 = arith.constant 0 : index
    %c4992 = arith.constant 4992 : index
    %43 = vector.load %arg3[%c0_42, %c4992] : memref<8x5632xf32, #tpu.memory_space<vmem>>, vector<8x128xf32>
    tpu.vector_store %arg3[%c0_42, %c4992], %3 {strides = array<i32>} : memref<8x5632xf32, #tpu.memory_space<vmem>>, vector<8x128xf32>,
    %c0_43 = arith.constant 0 : index
    %c5120 = arith.constant 5120 : index
    %44 = vector.load %arg3[%c0_43, %c5120] : memref<8x5632xf32, #tpu.memory_space<vmem>>, vector<8x128xf32>
    tpu.vector_store %arg3[%c0_43, %c5120], %3 {strides = array<i32>} : memref<8x5632xf32, #tpu.memory_space<vmem>>, vector<8x128xf32>,
    %c0_44 = arith.constant 0 : index
    %c5248 = arith.constant 5248 : index
    %45 = vector.load %arg3[%c0_44, %c5248] : memref<8x5632xf32, #tpu.memory_space<vmem>>, vector<8x128xf32>
    tpu.vector_store %arg3[%c0_44, %c5248], %3 {strides = array<i32>} : memref<8x5632xf32, #tpu.memory_space<vmem>>, vector<8x128xf32>,
    %c0_45 = arith.constant 0 : index
    %c5376 = arith.constant 5376 : index
    %46 = vector.load %arg3[%c0_45, %c5376] : memref<8x5632xf32, #tpu.memory_space<vmem>>, vector<8x128xf32>
    tpu.vector_store %arg3[%c0_45, %c5376], %3 {strides = array<i32>} : memref<8x5632xf32, #tpu.memory_space<vmem>>, vector<8x128xf32>,
    %c0_46 = arith.constant 0 : index
    %c5504 = arith.constant 5504 : index
    %47 = vector.load %arg3[%c0_46, %c5504] : memref<8x5632xf32, #tpu.memory_space<vmem>>, vector<8x128xf32>
    tpu.vector_store %arg3[%c0_46, %c5504], %3 {strides = array<i32>} : memref<8x5632xf32, #tpu.memory_space<vmem>>, vector<8x128xf32>,
    return
  }
  func.func @transform_0(%arg0: i32) -> (i32, i32) {
    %c0_i32 = arith.constant 0 : i32
    %c0_i32_0 = arith.constant 0 : i32
    %c0_i32_1 = arith.constant 0 : i32
    return %c0_i32, %c0_i32_0 : i32, i32
  }
  func.func @transform_1(%arg0: i32) -> (i32, i32) {
    %c0_i32 = arith.constant 0 : i32
    %c0_i32_0 = arith.constant 0 : i32
    %c0_i32_1 = arith.constant 0 : i32
    return %c0_i32, %c0_i32_0 : i32, i32
  }
  func.func @transform_2(%arg0: i32) -> (i32, i32) {
    %c0_i32 = arith.constant 0 : i32
    %c0_i32_0 = arith.constant 0 : i32
    return %c0_i32, %arg0 : i32, i32
  }
}

</mosaic_0001>

<bundles_post_ra>
// kernel: tpu_custom_call.1
= control target key start
LH: loop header
LB: loop body
LE: loop exit
PB: predicated region body
PF: predicated region fallthrough
CT: control target
= control target key end

     0   :  { %7 = vsyncpa [#allocation4], 0  ;;  %s252_s0 = inlined_call_operand.hbm [shape: f32[8,32], index: 0, kind: input, shape index: {}]   ;;  %s253_s1 = inlined_call_operand.hbm [shape: f32[32,128], index: 1, kind: input, shape index: {}]   ;;  %s254_s2 = inlined_call_operand.hbm [shape: f32[8,5632], index: 2, kind: output, shape index: {}]  }
   0x1   :  { %8 = vsyncpa [#allocation7], 0 }
   0x2   :  { %9 = vsyncpa [#allocation5], 0  ;;  %s15_s11 = sshll.u32 %s252_s0, 4  ;;  %s223_s12 = smov [#allocation3]   ;;  %s16_s11 = int_to_ptr.hbm [resolvable:$true] %s15_s11 }
   0x3   :  { %s17_s13 = sshll.u32 %s223_s12, 4  ;;  %s25_s16 = sshll.u32 %s253_s1, 4  ;;  %s18_s13 = int_to_ptr.vmem [resolvable:$true] %s17_s13  ;;  %s26_s16 = int_to_ptr.hbm [resolvable:$true] %s25_s16 }
   0x4   :  { %20 = dma.hbm_to_vmem [thread:$0]  %s16_s11, 128, %s18_s13, [#allocation4]  }
   0x5   :  { %s224_s17 = smov [#allocation6]   ;;  %s225_s19 = smov 128  }
   0x6   :  { %s27_s18 = sshll.u32 %s224_s17, 4  ;;  %s226_s20 = smov 8   ;;  %s28_s18 = int_to_ptr.vmem [resolvable:$true] %s27_s18 }
   0x7   :  { %33 = dma.hbm_to_vmem [thread:$0]  %s26_s16, 512, %s28_s18, [#allocation7], %s225_s19, %s225_s19, %s226_s20  }
   0x8   :  { %217 = dma.done.wait [#allocation4], 128  }
   0x9   :  { %218 = vsyncadd [#allocation4], 4294967168 }
   0xa   :  { %219 = dma.done.wait [#allocation7], 512  }
   0xb   :  { %220 = vsyncadd [#allocation7], 4294966784  ;;  %v50_v0 = vld [vmem:[#allocation6 + $0x18] sm:$0xff]  ;;  %v49_v1 = vld [vmem:[#allocation6 + $0x10] sm:$0xff]  ;;  %vm51_vm0 = vcmask 261120   ;;  %s227_s0 = smov [#allocation8]  }
   0xc   :  { %67 = vmatpush.msra.mxu0 %v50_v0  ;;  %v48_v2 = vld [vmem:[#allocation6 + $0x8] sm:$0xff]  ;;  %v47_v3 = vld [vmem:[#allocation6] sm:$0xff]  ;;  %v46_v4 = vld [vmem:[#allocation3] sm:$0xff]  ;;  %s126_s1 = sshll.u32 %s227_s0, 4  ;;  %s128_s23 = sshll.u32 %s254_s2, 4  ;;  %s127_s1 = int_to_ptr.vmem [resolvable:$true] %s126_s1  ;;  %s129_s23 = int_to_ptr.hbm [resolvable:$true] %s128_s23 }
   0xe   :  { %68 = vmatpush.msra.mxu0 %v49_v1 }
  0x10   :  { %69 = vmatpush.msra.mxu0 %v48_v2 }
  0x12   :  { %70 = vmatpush.msra.mxu0 %v47_v3 }
  0x13   :  { %139 = vmatmul.msk.f32.vlgmr.msra.gmra.mxu0 %vm51_vm0, %v46_v4 }
  0x90   :  { %v72_v5 = vpop.f32.mrf.mxu0 }
  0x91   :  { %77 = vst [vmem:[#allocation8] sm:$0xff] %v72_v5 }
  0x92   :  { %78 = vst [vmem:[#allocation8 + $0x8] sm:$0xff] %v72_v5 }
  0x93   :  { %79 = vst [vmem:[#allocation8 + $0x10] sm:$0xff] %v72_v5 }
  0x94   :  { %80 = vst [vmem:[#allocation8 + $0x18] sm:$0xff] %v72_v5 }
  0x95   :  { %81 = vst [vmem:[#allocation8 + $0x20] sm:$0xff] %v72_v5 }
  0x96   :  { %82 = vst [vmem:[#allocation8 + $0x28] sm:$0xff] %v72_v5 }
  0x97   :  { %83 = vst [vmem:[#allocation8 + $0x30] sm:$0xff] %v72_v5 }
  0x98   :  { %84 = vst [vmem:[#allocation8 + $0x38] sm:$0xff] %v72_v5 }
  0x99   :  { %85 = vst [vmem:[#allocation8 + $0x40] sm:$0xff] %v72_v5 }
  0x9a   :  { %86 = vst [vmem:[#allocation8 + $0x48] sm:$0xff] %v72_v5 }
  0x9b   :  { %87 = vst [vmem:[#allocation8 + $0x50] sm:$0xff] %v72_v5 }
  0x9c   :  { %88 = vst [vmem:[#allocation8 + $0x58] sm:$0xff] %v72_v5 }
  0x9d   :  { %89 = vst [vmem:[#allocation8 + $0x60] sm:$0xff] %v72_v5 }
  0x9e   :  { %90 = vst [vmem:[#allocation8 + $0x68] sm:$0xff] %v72_v5 }
  0x9f   :  { %91 = vst [vmem:[#allocation8 + $0x70] sm:$0xff] %v72_v5 }
  0xa0   :  { %92 = vst [vmem:[#allocation8 + $0x78] sm:$0xff] %v72_v5 }
  0xa1   :  { %93 = vst [vmem:[#allocation8 + $0x80] sm:$0xff] %v72_v5 }
  0xa2   :  { %94 = vst [vmem:[#allocation8 + $0x88] sm:$0xff] %v72_v5 }
  0xa3   :  { %95 = vst [vmem:[#allocation8 + $0x90] sm:$0xff] %v72_v5 }
  0xa4   :  { %96 = vst [vmem:[#allocation8 + $0x98] sm:$0xff] %v72_v5 }
  0xa5   :  { %97 = vst [vmem:[#allocation8 + $0xa0] sm:$0xff] %v72_v5 }
  0xa6   :  { %98 = vst [vmem:[#allocation8 + $0xa8] sm:$0xff] %v72_v5 }
  0xa7   :  { %99 = vst [vmem:[#allocation8 + $0xb0] sm:$0xff] %v72_v5 }
  0xa8   :  { %100 = vst [vmem:[#allocation8 + $0xb8] sm:$0xff] %v72_v5 }
  0xa9   :  { %101 = vst [vmem:[#allocation8 + $0xc0] sm:$0xff] %v72_v5 }
  0xaa   :  { %102 = vst [vmem:[#allocation8 + $0xc8] sm:$0xff] %v72_v5 }
  0xab   :  { %103 = vst [vmem:[#allocation8 + $0xd0] sm:$0xff] %v72_v5 }
  0xac   :  { %104 = vst [vmem:[#allocation8 + $0xd8] sm:$0xff] %v72_v5 }
  0xad   :  { %105 = vst [vmem:[#allocation8 + $0xe0] sm:$0xff] %v72_v5 }
  0xae   :  { %106 = vst [vmem:[#allocation8 + $0xe8] sm:$0xff] %v72_v5 }
  0xaf   :  { %107 = vst [vmem:[#allocation8 + $0xf0] sm:$0xff] %v72_v5 }
  0xb0   :  { %108 = vst [vmem:[#allocation8 + $0xf8] sm:$0xff] %v72_v5 }
  0xb1   :  { %109 = vst [vmem:[#allocation8 + $0x100] sm:$0xff] %v72_v5 }
  0xb2   :  { %110 = vst [vmem:[#allocation8 + $0x108] sm:$0xff] %v72_v5 }
  0xb3   :  { %111 = vst [vmem:[#allocation8 + $0x110] sm:$0xff] %v72_v5 }
  0xb4   :  { %112 = vst [vmem:[#allocation8 + $0x118] sm:$0xff] %v72_v5 }
  0xb5   :  { %113 = vst [vmem:[#allocation8 + $0x120] sm:$0xff] %v72_v5 }
  0xb6   :  { %114 = vst [vmem:[#allocation8 + $0x128] sm:$0xff] %v72_v5 }
  0xb7   :  { %115 = vst [vmem:[#allocation8 + $0x130] sm:$0xff] %v72_v5 }
  0xb8   :  { %116 = vst [vmem:[#allocation8 + $0x138] sm:$0xff] %v72_v5 }
  0xb9   :  { %117 = vst [vmem:[#allocation8 + $0x140] sm:$0xff] %v72_v5 }
  0xba   :  { %118 = vst [vmem:[#allocation8 + $0x148] sm:$0xff] %v72_v5 }
  0xbb   :  { %119 = vst [vmem:[#allocation8 + $0x150] sm:$0xff] %v72_v5 }
  0xbc   :  { %120 = vst [vmem:[#allocation8 + $0x158] sm:$0xff] %v72_v5 }
  0xbd   :  { %131 = dma.vmem_to_hbm [thread:$0]  %s127_s1, 5632, %s129_s23, [#allocation5]  }
  0xbe   :  { %221 = dma.done.wait [#allocation5], 5632  }
  0xbf   :  { %222 = vsyncadd [#allocation5], 4294961664 }
  0xc0   :  { %136 = vsyncpa [#allocation4], 1 }
  0xc1   :  { %137 = vsyncpa [#allocation7], 1 }
  0xc2   :  { %138 = vsyncpa [#allocation5], 1 }

</bundles_post_ra>
